<compile_context>
chip_gen: v5e
topology: v5e:2x2
jax: 0.10.0
libtpu: 0.0.40
codegen_flags: <defaults>
</compile_context>

<pallas_src>
import functools

import jax
import jax.numpy as jnp
from jax import lax
from jax.experimental import pallas as pl
from jax.experimental.pallas import tpu as pltpu


# ------------------------------ Pallas kernel --------------------------------


def _shift_flat(x, s):
    """Static circular shift along the last axis: out[..., p] = x[..., (p + s) % P]."""
    p = x.shape[-1]
    s = s % p
    if s == 0:
        return x
    return jnp.concatenate([x[..., s:], x[..., :s]], axis=-1)


def _enc_kernel(col_ref, w_ref, b_ref, x_ref, o_ref, *, q, wout):
    """Fused circular conv (on space-to-depth input) + bias + ReLU.

    col_ref: (1, P)  int32          column index j of flattened pixel p = i*Wout + j
    w_ref:   (Q*Q, TCout, C4) f32   per-tap weight matrices, tap = du*Q + dv
    b_ref:   (TCout, 1) f32
    x_ref:   (C4, P)  f32/bf16      space-to-depth input, full spatial extent
    o_ref:   (TCout, P) f32/bf16
    """
    xs = x_ref[...].astype(jnp.float32)       # all in-kernel math in f32
    col = col_ref[...]                        # (1, P)
    acc = None
    for dv in range(q):
        if dv == 0:
            cslab = xs
        else:
            # Column neighbour j+dv: flat +dv everywhere except the last dv
            # columns of each row, which wrap to column j+dv-Wout (circular pad).
            no_wrap = _shift_flat(xs, dv)
            wrapped = _shift_flat(xs, dv - wout)
            wrap = jnp.broadcast_to(col >= (wout - dv), xs.shape)
            cslab = jnp.where(wrap, wrapped, no_wrap)
        for du in range(q):
            # Row shift is an exact flat roll because the space-to-depth image
            # is (Hout, Wout)-periodic (2*pad == k - stride).
            slab = cslab if du == 0 else _shift_flat(cslab, du * wout)
            tap = du * q + dv
            z = jnp.dot(w_ref[tap], slab, preferred_element_type=jnp.float32)
            acc = z if acc is None else acc + z
    y = jnp.maximum(acc + b_ref[...], 0.0)
    o_ref[...] = y.astype(o_ref.dtype)


def _vmem_limit_bytes():
    cap = 128 * 1024 * 1024
    try:
        cap = int(pltpu.get_tpu_info().vmem_capacity_bytes)
    except Exception:
        pass
    # -> 64 MiB on v5e/v6e (128 MiB physical), 32 MiB on v7x (64 MiB physical).
    return int(min(96 * 1024 * 1024, max(32 * 1024 * 1024, cap // 2)))


# -------------------------------- JAX glue ------------------------------------


def _weight_norm(v, g):
    # PyTorch weight_norm(dim=0): W[o] = g[o] * V[o] / ||V[o]||  (no epsilon, as in torch)
    norm = jnp.sqrt(jnp.sum(v * v, axis=(1, 2, 3), keepdims=True))
    return g * v / norm


def _space_to_depth_periodic(x, s, pad):
    # xs[n, (c*s+a)*s+b, i*Wout + j] = x[n, c, (s*i + a - pad) % H, (s*j + b - pad) % W]
    n, c, h, w = x.shape
    hout, wout = h // s, w // s
    xr = jnp.roll(x, shift=(pad, pad), axis=(2, 3))
    xs = xr.reshape(n, c, hout, s, wout, s).transpose(0, 1, 3, 5, 2, 4)
    return xs.reshape(n, c * s * s, hout * wout), hout, wout


def _tap_weights(w_eff, s):
    # (Cout, Cin, k, k) -> (Q*Q, Cout, Cin*s*s); tap = du*Q + dv, c4 = (c*s+a)*s+b
    cout, cin, k, _ = w_eff.shape
    q = k // s
    wt = w_eff.reshape(cout, cin, q, s, q, s).transpose(2, 4, 0, 1, 3, 5)
    return wt.reshape(q * q, cout, cin * s * s)


@functools.partial(jax.jit, static_argnames=("kernel_size", "stride", "pad", "use_bf16"))
def encoder_block_forward(x, v, g, b, *, kernel_size, stride, pad, use_bf16=True):
    """x: (N, Cin, H, W) NCHW.  Returns (N, Cout, H//stride, W//stride)."""
    n, cin, h, w = x.shape
    cout = v.shape[0]
    k, s = kernel_size, stride
    if k % s != 0 or 2 * pad != k - s or h % s != 0 or w % s != 0:
        # TODO(synk): general (k, stride, pad) configs need a halo-tiled (non-periodic) path.
        raise NotImplementedError(
            "fused encoder kernel requires kernel % stride == 0, 2*pad == kernel - stride, "
            "and stride | H, W (PhyCRNet encoder uses k=4, s=2, p=1)")
    q = k // s
    c4 = cin * s * s

    w_taps = _tap_weights(_weight_norm(v, g), s).astype(jnp.float32)   # (Q*Q, Cout, C4)
    bias = b.reshape(cout, 1).astype(jnp.float32)
    xs, hout, wout = _space_to_depth_periodic(x, s, pad)               # (N, C4, P)
    p = hout * wout
    col_ids = (jnp.arange(p, dtype=jnp.int32) % wout).reshape(1, p)

    io_dtype = jnp.bfloat16 if use_bf16 else jnp.float32
    io_bytes = 2 if use_bf16 else 4
    xs = xs.astype(io_dtype)

    # Split Cout into 2 grid blocks when the sub-block keeps a legal (16,128)
    # tiling, so both v7x TensorCores get work even at N == 1 (free on v5e/v6e).
    n_cb = 2 if (cout % 32 == 0) else 1
    tcout = cout // n_cb

    vmem_limit = _vmem_limit_bytes()
    # Rough per-step VMEM: double-buffered blocks + f32 working slabs.
    step_bytes = (2 * (c4 * p + tcout * p) * io_bytes
                  + 2 * (q * q * cout * c4 + cout + p) * 4
                  + (6 * c4 * p + 2 * tcout * p) * 4)
    if step_bytes > vmem_limit:
        # TODO(synk): tile the spatial dim (with an Hout halo) for very large images.
        raise NotImplementedError(f"image too large for single-tile VMEM kernel ({step_bytes} B)")

    y = pl.pallas_call(
        functools.partial(_enc_kernel, q=q, wout=wout),
        out_shape=jax.ShapeDtypeStruct((n, cout, p), io_dtype),
        grid=(n, n_cb),
        in_specs=[
            pl.BlockSpec((1, p), lambda bi, ci: (0, 0)),                  # col ids (resident)
            pl.BlockSpec((q * q, tcout, c4), lambda bi, ci: (0, ci, 0)),  # per-tap weights
            pl.BlockSpec((tcout, 1), lambda bi, ci: (ci, 0)),             # bias
            pl.BlockSpec((None, c4, p), lambda bi, ci: (bi, 0, 0)),       # s2d input (full P)
        ],
        out_specs=pl.BlockSpec((None, tcout, p), lambda bi, ci: (bi, ci, 0)),
        compiler_params=pltpu.CompilerParams(
            dimension_semantics=("parallel", "parallel"),
            vmem_limit_bytes=vmem_limit,
        ),
        cost_estimate=pl.CostEstimate(
            flops=int(2 * n * cout * c4 * q * q * p),
            transcendentals=0,
            bytes_accessed=int(n * (c4 + cout) * p * io_bytes
                               + (q * q * cout * c4 + cout + p) * 4),
        ),
    )(col_ids, w_taps, bias, xs)

    # (N, Cout, P) is already NCHW-flattened spatial: plain reshape, no transpose.
    return y.reshape(n, cout, hout, wout)


# ----------------------------- pure-JAX reference -----------------------------


def _reference(x, v, g, b, *, stride, pad):
    w_eff = _weight_norm(v, g)
    xp = jnp.pad(x, ((0, 0), (0, 0), (pad, pad), (pad, pad)), mode="wrap")
    y = lax.conv_general_dilated(
        xp, w_eff, (stride, stride), "VALID",
        dimension_numbers=("NCHW", "OIHW", "NCHW"),
        precision=lax.Precision.HIGHEST,
    )
    return jnp.maximum(y + b.reshape(1, -1, 1, 1), 0.0)


# ----------------------------------- main --------------------------------------

if __name__ == "__main__":
    # Small shapes consistent with PhyCRNet encoder_block(input_channels,
    # hidden_channels, input_kernel_size=4, input_stride=2, input_padding=1).
    N, CIN, H, W = 2, 4, 16, 16
    COUT, KSIZE, STRIDE, PAD = 32, 4, 2, 1

    key = jax.random.PRNGKey(0)
    kx, kv, kg, kb = jax.random.split(key, 4)
    x = jax.random.normal(kx, (N, CIN, H, W), dtype=jnp.float32)
    # weight_norm parametrization (v, g).
    v = jax.random.normal(kv, (COUT, CIN, KSIZE, KSIZE), dtype=jnp.float32) * 0.1
    g = jax.random.uniform(kg, (COUT, 1, 1, 1), dtype=jnp.float32, minval=0.5, maxval=1.5)
    # Module init is zeros; use a small non-zero bias so the bias path is exercised.
    b = jax.random.normal(kb, (COUT,), dtype=jnp.float32) * 0.1

    ref = jax.block_until_ready(_reference(x, v, g, b, stride=STRIDE, pad=PAD))

    # Strict f32 path.
    out_f32 = jax.block_until_ready(encoder_block_forward(
        x, v, g, b, kernel_size=KSIZE, stride=STRIDE, pad=PAD, use_bf16=False))
    assert out_f32.shape == ref.shape == (N, COUT, H // STRIDE, W // STRIDE), out_f32.shape
    assert jnp.allclose(out_f32, ref, atol=1e-4, rtol=1e-4), float(
        jnp.max(jnp.abs(out_f32 - ref)))

    # Default fast path: bf16 HBM streams, f32 in-kernel math.
    out_bf16 = jax.block_until_ready(encoder_block_forward(
        x, v, g, b, kernel_size=KSIZE, stride=STRIDE, pad=PAD))
    assert out_bf16.shape == ref.shape
    assert jnp.allclose(out_bf16.astype(jnp.float32), ref, atol=5e-2, rtol=5e-2), float(
        jnp.max(jnp.abs(out_bf16.astype(jnp.float32) - ref)))

    print("KERNEL_OK")
</pallas_src>

<mosaic_0001>
module attributes {stable_mosaic.version = 11 : i64} {
  func.func @_enc_kernel(%arg0: i32, %arg1: i32, %arg2: memref<1x64xi32, #tpu.memory_space<vmem>>, %arg3: memref<4x16x16xf32, #tpu.memory_space<vmem>>, %arg4: memref<16x1xf32, #tpu.memory_space<vmem>>, %arg5: memref<1x16x64xf32, #tpu.memory_space<vmem>>, %arg6: memref<1x16x64xf32, #tpu.memory_space<vmem>>) attributes {dimension_semantics = [#tpu.dimension_semantics<parallel>, #tpu.dimension_semantics<parallel>], iteration_bounds = array<i64: 2, 2>, scalar_prefetch = 0 : i64, scratch_operands = 0 : i64, tpu.core_type = #tpu.core_type<tc>, window_params = [{pipeline_mode = #tpu.pipeline_mode<synchronous>, transform_indices = @transform_0, window_bounds = array<i64: 1, 64>}, {transform_indices = @transform_1, window_bounds = array<i64: 4, 16, 16>}, {transform_indices = @transform_2, window_bounds = array<i64: 16, 1>}, {transform_indices = @transform_3, window_bounds = array<i64: 1, 16, 64>}, {transform_indices = @transform_4, window_bounds = array<i64: 1, 16, 64>}]} {
    %c0 = arith.constant 0 : index
    %c0_0 = arith.constant 0 : index
    %c0_1 = arith.constant 0 : index
    %0 = vector.load %arg5[%c0, %c0_0, %c0_1] : memref<1x16x64xf32, #tpu.memory_space<vmem>>, vector<1x16x64xf32>
    %1 = vector.shape_cast %0 : vector<1x16x64xf32> to vector<16x64xf32>
    %c0_2 = arith.constant 0 : index
    %c0_3 = arith.constant 0 : index
    %2 = vector.load %arg2[%c0_2, %c0_3] : memref<1x64xi32, #tpu.memory_space<vmem>>, vector<1x64xi32>
    %c0_4 = arith.constant 0 : index
    %c0_5 = arith.constant 0 : index
    %c0_6 = arith.constant 0 : index
    %3 = vector.load %arg3[%c0_4, %c0_5, %c0_6] : memref<4x16x16xf32, #tpu.memory_space<vmem>>, vector<1x16x16xf32>
    %4 = vector.shape_cast %3 : vector<1x16x16xf32> to vector<16x16xf32>
    %cst = arith.constant dense<0.000000e+00> : vector<16x64xf32>
    %5 = tpu.matmul %4, %1, %cst {dimension_numbers = #tpu.dot_dimension_numbers<[1], [0], [0], [1], [0, 0, 1, 1], [], []>} : vector<16x16xf32>, vector<16x64xf32>, vector<16x64xf32> -> vector<16x64xf32>
    %6 = vector.extract_strided_slice %1 {offsets = [0, 8], sizes = [16, 56], strides = [1, 1]} : vector<16x64xf32> to vector<16x56xf32>
    %7 = vector.extract_strided_slice %1 {offsets = [0, 0], sizes = [16, 8], strides = [1, 1]} : vector<16x64xf32> to vector<16x8xf32>
    %8 = tpu.concatenate %6, %7 in 1 : vector<16x56xf32>, vector<16x8xf32> -> vector<16x64xf32>
    %c2 = arith.constant 2 : index
    %c0_7 = arith.constant 0 : index
    %c0_8 = arith.constant 0 : index
    %9 = vector.load %arg3[%c2, %c0_7, %c0_8] : memref<4x16x16xf32, #tpu.memory_space<vmem>>, vector<1x16x16xf32>
    %10 = vector.shape_cast %9 : vector<1x16x16xf32> to vector<16x16xf32>
    %cst_9 = arith.constant dense<0.000000e+00> : vector<16x64xf32>
    %11 = tpu.matmul %10, %8, %cst_9 {dimension_numbers = #tpu.dot_dimension_numbers<[1], [0], [0], [1], [0, 0, 1, 1], [], []>} : vector<16x16xf32>, vector<16x64xf32>, vector<16x64xf32> -> vector<16x64xf32>
    %12 = arith.addf %5, %11 : vector<16x64xf32>
    %13 = vector.extract_strided_slice %1 {offsets = [0, 1], sizes = [16, 63], strides = [1, 1]} : vector<16x64xf32> to vector<16x63xf32>
    %14 = vector.extract_strided_slice %1 {offsets = [0, 0], sizes = [16, 1], strides = [1, 1]} : vector<16x64xf32> to vector<16x1xf32>
    %15 = tpu.concatenate %13, %14 in 1 : vector<16x63xf32>, vector<16x1xf32> -> vector<16x64xf32>
    %16 = vector.extract_strided_slice %1 {offsets = [0, 57], sizes = [16, 7], strides = [1, 1]} : vector<16x64xf32> to vector<16x7xf32>
    %17 = vector.extract_strided_slice %1 {offsets = [0, 0], sizes = [16, 57], strides = [1, 1]} : vector<16x64xf32> to vector<16x57xf32>
    %18 = tpu.concatenate %16, %17 in 1 : vector<16x7xf32>, vector<16x57xf32> -> vector<16x64xf32>
    %c7_i32 = arith.constant 7 : i32
    %19 = vector.broadcast %c7_i32 : i32 to vector<1x64xi32>
    %20 = arith.cmpi sge, %2, %19 : vector<1x64xi32>
    %21 = vector.shape_cast %20 : vector<1x64xi1> to vector<1x64xi1>
    %22 = vector.broadcast %21 : vector<1x64xi1> to vector<16x64xi1>
    %23 = arith.select %22, %18, %15 : vector<16x64xi1>, vector<16x64xf32>
    %c1 = arith.constant 1 : index
    %c0_10 = arith.constant 0 : index
    %c0_11 = arith.constant 0 : index
    %24 = vector.load %arg3[%c1, %c0_10, %c0_11] : memref<4x16x16xf32, #tpu.memory_space<vmem>>, vector<1x16x16xf32>
    %25 = vector.shape_cast %24 : vector<1x16x16xf32> to vector<16x16xf32>
    %cst_12 = arith.constant dense<0.000000e+00> : vector<16x64xf32>
    %26 = tpu.matmul %25, %23, %cst_12 {dimension_numbers = #tpu.dot_dimension_numbers<[1], [0], [0], [1], [0, 0, 1, 1], [], []>} : vector<16x16xf32>, vector<16x64xf32>, vector<16x64xf32> -> vector<16x64xf32>
    %27 = arith.addf %12, %26 : vector<16x64xf32>
    %28 = vector.extract_strided_slice %23 {offsets = [0, 8], sizes = [16, 56], strides = [1, 1]} : vector<16x64xf32> to vector<16x56xf32>
    %29 = vector.extract_strided_slice %23 {offsets = [0, 0], sizes = [16, 8], strides = [1, 1]} : vector<16x64xf32> to vector<16x8xf32>
    %30 = tpu.concatenate %28, %29 in 1 : vector<16x56xf32>, vector<16x8xf32> -> vector<16x64xf32>
    %c3 = arith.constant 3 : index
    %c0_13 = arith.constant 0 : index
    %c0_14 = arith.constant 0 : index
    %31 = vector.load %arg3[%c3, %c0_13, %c0_14] : memref<4x16x16xf32, #tpu.memory_space<vmem>>, vector<1x16x16xf32>
    %32 = vector.shape_cast %31 : vector<1x16x16xf32> to vector<16x16xf32>
    %cst_15 = arith.constant dense<0.000000e+00> : vector<16x64xf32>
    %33 = tpu.matmul %32, %30, %cst_15 {dimension_numbers = #tpu.dot_dimension_numbers<[1], [0], [0], [1], [0, 0, 1, 1], [], []>} : vector<16x16xf32>, vector<16x64xf32>, vector<16x64xf32> -> vector<16x64xf32>
    %34 = arith.addf %27, %33 : vector<16x64xf32>
    %c0_16 = arith.constant 0 : index
    %c0_17 = arith.constant 0 : index
    %35 = vector.load %arg4[%c0_16, %c0_17] : memref<16x1xf32, #tpu.memory_space<vmem>>, vector<16x1xf32>
    %36 = vector.broadcast %35 : vector<16x1xf32> to vector<16x64xf32>
    %37 = arith.addf %34, %36 : vector<16x64xf32>
    %cst_18 = arith.constant 0.000000e+00 : f32
    %38 = vector.broadcast %cst_18 : f32 to vector<16x64xf32>
    %39 = arith.maximumf %37, %38 : vector<16x64xf32>
    %c0_19 = arith.constant 0 : index
    %c0_20 = arith.constant 0 : index
    %c0_21 = arith.constant 0 : index
    %40 = vector.load %arg6[%c0_19, %c0_20, %c0_21] : memref<1x16x64xf32, #tpu.memory_space<vmem>>, vector<1x16x64xf32>
    %41 = vector.shape_cast %40 : vector<1x16x64xf32> to vector<16x64xf32>
    %42 = vector.shape_cast %39 : vector<16x64xf32> to vector<1x16x64xf32>
    tpu.vector_store %arg6[%c0_19, %c0_20, %c0_21], %42 {strides = array<i32>} : memref<1x16x64xf32, #tpu.memory_space<vmem>>, vector<1x16x64xf32>,
    return
  }
  func.func @transform_0(%arg0: i32, %arg1: i32) -> (i32, i32) {
    %c0_i32 = arith.constant 0 : i32
    %c0_i32_0 = arith.constant 0 : i32
    %c0_i32_1 = arith.constant 0 : i32
    return %c0_i32, %c0_i32_0 : i32, i32
  }
  func.func @transform_1(%arg0: i32, %arg1: i32) -> (i32, i32, i32) {
    %c0_i32 = arith.constant 0 : i32
    %c0_i32_0 = arith.constant 0 : i32
    %c0_i32_1 = arith.constant 0 : i32
    return %c0_i32, %arg1, %c0_i32_0 : i32, i32, i32
  }
  func.func @transform_2(%arg0: i32, %arg1: i32) -> (i32, i32) {
    %c0_i32 = arith.constant 0 : i32
    %c0_i32_0 = arith.constant 0 : i32
    return %arg1, %c0_i32 : i32, i32
  }
  func.func @transform_3(%arg0: i32, %arg1: i32) -> (i32, i32, i32) {
    %c0_i32 = arith.constant 0 : i32
    %c0_i32_0 = arith.constant 0 : i32
    %c0_i32_1 = arith.constant 0 : i32
    return %arg0, %c0_i32, %c0_i32_0 : i32, i32, i32
  }
  func.func @transform_4(%arg0: i32, %arg1: i32) -> (i32, i32, i32) {
    %c0_i32 = arith.constant 0 : i32
    %c0_i32_0 = arith.constant 0 : i32
    return %arg0, %arg1, %c0_i32 : i32, i32, i32
  }
}

</mosaic_0001>

<bundles_post_ra>
// kernel: encoder_block_forward.1
= control target key start
LH: loop header
LB: loop body
LE: loop exit
PB: predicated region body
PF: predicated region fallthrough
CT: control target
= control target key end

     0   :  { %s892_s15 = smov 0   ;;  %s894_s16 = smov 0   ;;  %s1028_s0 = inlined_call_operand.vmem [shape: s32[1,64], index: 0, kind: input, shape index: {}]   ;;  %s1029_s1 = inlined_call_operand.vmem [shape: f32[4,32,16], index: 1, kind: input, shape index: {}]   ;;  %s1030_s2 = inlined_call_operand.vmem [shape: f32[32,1], index: 2, kind: input, shape index: {}]   ;;  %s1031_s3 = inlined_call_operand.vmem [shape: f32[2,16,64], index: 3, kind: input, shape index: {}]   ;;  %s1032_s4 = inlined_call_operand.vmem [shape: f32[2,32,64], index: 4, kind: output, shape index: {}]  }
   0x1   :  { %s896_s17 = smov 0   ;;  %s898_s18 = smov 0  }
   0x2   :  { %s900_s19 = smov 0   ;;  %s902_s20 = smov 0  }
   0x3   :  { %s904_s21 = smov 0  }
   0x4 LB: > { %s23_s22 = sadd.s32 1, %s850_s19  ;;  %s26_s23 = sadd.s32 1, %s854_s20  ;;  %s858_s21 = sphi %s904_s21, %s14_s21   ;;  %s854_s20 = sphi %s902_s20, %s1040_s20   ;;  %s850_s19 = sphi %s900_s19, %s1039_s19   ;;  %s846_s18 = sphi %s898_s18, %s1038_s18   ;;  %s842_s17 = sphi %s896_s17, %s1037_s17   ;;  %s838_s16 = sphi %s894_s16, %s1036_s16   ;;  %s834_s15 = sphi %s892_s15, %s1035_s15  }
   0x5   : > { %p24_p0 = scmp.ge.s32.totalorder %s23_s22, 2  ;;  %s54_s24 = sadd.s32 1, %s838_s16 }
   0x6   : > { %p61_p1 = scmp.ne.s32.totalorder %s838_s16, %s834_s15  ;;  %p62_p2 = scmp.eq.s32.totalorder %s858_s21, 0 }
   0x7   : > { %s1042_s22 = smov (%p24_p0, %s23_s22), 0  ;;  %s1044_s23 = smov (!%p24_p0, %s26_s23), %s854_s20 }
   0x8   : > { %s51_s25 = ssub.s32 %s850_s19, %s1042_s22  ;;  %p63_p3 = por %p62_p2, %p61_p1 }
   0x9   : > { %p28_p4 = scmp.ge.s32.totalorder %s1044_s23, 2  ;;  %p52_p5 = scmp.eq.s32.totalorder %s51_s25, 0 }
   0xa   : > { %p668_p6 = scmp.ge.s32.totalorder %s858_s21, 4 }
   0xb   : > { %s1046_s23 = smov (%p28_p4, %s1044_s23), 0 }
   0xc   : > { %s941_s26 = scalar_select %p52_p5, %s838_s16, %s54_s24  }
   0xd   : > { %170 = sbr.rel (%p668_p6) target bundleno = 30 (0x1e), region = 20 }
  0x12   : > { %173 = sbr.rel (!%p63_p3) target bundleno = 30 (0x1e), region = 24  ;;  %s175_s27 = sand.u32 (%p63_p3), 1, %s838_s16  }
  0x13   : > { %s697_s28 = sshll.u32 (%p63_p3), %s850_s19, 4  ;;  %s669_s29 = sshll.u32 (%p63_p3), %s175_s27, 6 }
  0x14   : > { %s180_s6 = scalar_lea.vmem (%p63_p3), %s1029_s1, %s697_s28  ;;  %s177_s7 = scalar_lea.vmem (%p63_p3), [#allocation2], %s669_s29 }
  0x15   : > { %v223_v0 = vld [vmem:[%s180_s6] sm:$0xff] (%p63_p3)  ;;  %v225_v1 = vld [vmem:[%s180_s6 + $0x8] sm:$0xff] (%p63_p3) }
  0x16   : > { %v227_v2 = vld [vmem:[%s180_s6 + $0x20] sm:$0xff] (%p63_p3)  ;;  %224 = vst [vmem:[%s177_s7] sm:$0xff] (%p63_p3), %v223_v0  ;;  %v229_v3 = vld [vmem:[%s180_s6 + $0x28] sm:$0xff] (%p63_p3) }
  0x17   : > { %226 = vst [vmem:[%s177_s7 + $0x8] sm:$0xff] %v225_v1  ;;  %v231_v4 = vld [vmem:[%s180_s6 + $0x40] sm:$0xff]  ;;  %v233_v5 = vld [vmem:[%s180_s6 + $0x48] sm:$0xff] }
  0x18   : > { %228 = vst [vmem:[%s177_s7 + $0x10] sm:$0xff] %v227_v2  ;;  %v235_v6 = vld [vmem:[%s180_s6 + $0x60] sm:$0xff]  ;;  %v237_v7 = vld [vmem:[%s180_s6 + $0x68] sm:$0xff] }
  0x19   : > { %230 = vst [vmem:[%s177_s7 + $0x18] sm:$0xff] %v229_v3 }
  0x1a   : > { %232 = vst [vmem:[%s177_s7 + $0x20] sm:$0xff] %v231_v4 }
  0x1b   : > { %234 = vst [vmem:[%s177_s7 + $0x28] sm:$0xff] %v233_v5 }
  0x1c   : > { %236 = vst [vmem:[%s177_s7 + $0x30] sm:$0xff] %v235_v6 }
  0x1d   : > { %238 = vst [vmem:[%s177_s7 + $0x38] sm:$0xff] %v237_v7 }
  0x1e PF: > { %p672_p7 = scmp.ge.s32.totalorder %s858_s21, 1  ;;  %p260_p8 = scmp.lt.s32.totalorder %s858_s21, 5 }
  0x20   : > { %p261_p9 = pnand %p672_p7, %p260_p8 }
  0x21   : > { %p313_p10 = scmp.lt.s32.totalorder (!%p261_p9), %s846_s18, 1  ;;  %s860_s12 = smov (!%p261_p9), 71  }
  0x22   : > { %264 = sbr.rel (%p261_p9) target bundleno = 440 (0x1b8), region = 70  ;;  %s861_s13 = smov (!%p261_p9), 127  }
  0x23   : > { %s862_s14 = smov (!%p261_p9), 7   ;;  %s863_s24 = smov (!%p261_p9), 63  }
  0x24   : > { %s865_s28 = smov (!%p261_p9), 56   ;;  %s866_s29 = smov (!%p261_p9), 120  }
  0x25   : > { %s267_s30 = sand.u32 (!%p261_p9), 1, %s834_s15   ;;  %s674_s6 = sshll.u32 (!%p261_p9), %s842_s17, 1 }
  0x26   : > { %s673_s5 = sshll.u32 (!%p261_p9), %s267_s30, 6  ;;  %p308_p11 = scmp.lt.s32.totalorder (!%p261_p9), %s674_s6, 3 }
  0x27   : > { %s1048_s18 = smov (!%p313_p10, %s846_s18), 1  ;;  %v864_v11 = vmov 0   ;;  %v330_v12 = vld [vmem:[%s1028_s0] sm:$0x1]  ;;  %vm439_vm1 = vcmask 56320   ;;  %vm424_vm2 = vcmask 515072  }
  0x28   : > { %s698_s8 = sshll.u32 %s1048_s18, 4  ;;  %803 = vset.pattern.permute.xlu0 %v864_v11  ;;  %802 = vset.pattern.permute.xlu2 %v864_v11  ;;  %vm442_vm0 = vcmp.ge.s32.totalorder %v330_v12, 7  ;;  %vm353_vm4 = vcmask 130048   ;;  %s974_s7 = scalar_lea.vmem [#allocation2], %s673_s5  ;;  %vm347_vm5 = vcmask 457728   ;;  %vm548_vm6 = vcmask 523264  }
  0x29   : > { %s317_s11 = scalar_lea.vmem %s1031_s3, %s698_s8  ;;  %v443_v15 = vsel %vm442_vm0, 1, %v864_v11  ;;  %v687_v36 = vld [vmem:[%s974_s7 + $0x10] sm:$0xff]  ;;  %s1050_s6 = smov (!%p308_p11, %s674_s6), 3  ;;  %v331_v37 = vld [vmem:[%s974_s7] sm:$0xff]  ;;  %v688_v38 = vld [vmem:[%s974_s7 + $0x18] sm:$0xff] }
  0x2a   : > { %v328_v8 = vld [vmem:[%s317_s11] sm:$0xff]  ;;  %v329_v9 = vld [vmem:[%s317_s11 + $0x8] sm:$0xff]  ;;  %v444_v16 = vperm.slane %v443_v15, 0  ;;  %s675_s15 = sshll.u32 %s1050_s6, 3  ;;  %v691_v56 = vld [vmem:[%s974_s7 + $0x30] sm:$0xff]  ;;  %s679_s10 = sshll.u32 %s1048_s18, 2 }
  0x2b   : > { %v772_v10 = vpack.i.bf16 %v328_v8, %v329_v9  ;;  %403 = vmatpush.msra.mxu1 %v329_v9  ;;  %s311_s9 = scalar_lea.vmem %s1030_s2, %s675_s15  ;;  %v332_v40 = vld [vmem:[%s974_s7 + $0x8] sm:$0xff]  ;;  %v681_v57 = vld [vmem:[%s974_s7 + $0x20] sm:$0xff]  ;;  %v692_v60 = vld [vmem:[%s974_s7 + $0x38] sm:$0xff]  ;;  %s324_s11 = sadd.s32 %s679_s10, %s1050_s6 }
  0x2c   : > { %vm962_vm3 = vcmp.eq.s32.totalorder %v444_v16, 1  ;;  %v533_v41 = vld [vmem:[%s311_s9 + $0x8] sm:$0xff]  ;;  %v532_v42 = vld [vmem:[%s311_s9] sm:$0xff] }
  0x2d   : > { %773 = vrot.lane.b32.xlu1 %v772_v10, %s860_s12  ;;  %763 = vrot.lane.b32.xlu0 %v772_v10, %s861_s13  ;;  %v682_v61 = vld [vmem:[%s974_s7 + $0x28] sm:$0xff]  ;;  %s680_s12 = sshll.u32 %s324_s11, 3 }
  0x2e   : > { %404 = vmatpush.msra.mxu1 %v328_v8 }
  0x2f   : > { %685 = vmatmul.msk.f32.vlgmr.msra.gmra.mxu1 %vm353_vm4, %v331_v37 }
  0x35   : > { %778 = vrot.lane.b32.xlu1 %v772_v10, %s862_s14  ;;  %768 = vrot.lane.b32.xlu0 %v772_v10, %s863_s24  ;;  %s326_s24 = scalar_lea.vmem %s1032_s4, %s680_s12 }
  0x37   : > { %686 = vmatmul.msk.f32.gmra.mxu1 %vm353_vm4, %v332_v40 }
  0x9f   : > { %v774_v13 = vpop.permute.xlu1 %773  ;;  %v764_v14 = vpop.permute.xlu0 %763 }
  0xa0   : > { %v776_v18 = vunpack.i.h.bf16 %v774_v13  ;;  %v775_v19 = vunpack.i.l.bf16 %v774_v13  ;;  %v766_v20 = vunpack.i.h.bf16 %v764_v14  ;;  %v765_v21 = vunpack.i.l.bf16 %v764_v14 }
  0xa7   : > { %v779_v22 = vpop.permute.xlu1 %778  ;;  %v769_v23 = vpop.permute.xlu0 %768 }
  0xa8   : > { %v781_v24 = vunpack.i.h.bf16 %v779_v22  ;;  %v780_v25 = vunpack.i.l.bf16 %v779_v22  ;;  %v771_v26 = vunpack.i.h.bf16 %v769_v23  ;;  %v770_v27 = vunpack.i.l.bf16 %v769_v23 }
  0xaa   : > { %v440_v28 = vsel %vm439_vm1, %v776_v18, %v781_v24  ;;  %v425_v29 = vsel %vm424_vm2, %v766_v20, %v771_v26  ;;  %v426_v30 = vsel %vm424_vm2, %v765_v21, %v770_v27  ;;  %v441_v31 = vsel %vm439_vm1, %v775_v19, %v780_v25 }
  0xab   : > { %v447_v32 = vsel %vm962_vm3, %v441_v31, %v426_v30  ;;  %v446_v33 = vsel %vm962_vm3, %v440_v28, %v425_v29 }
  0xac   : > { %471 = vmatpush.msra.mxu2 %v447_v32  ;;  %v797_v34 = vpack.i.bf16 %v328_v8, %v446_v33  ;;  %v782_v35 = vpack.i.bf16 %v329_v9, %v447_v32  ;;  %v406_v62 = vpop.f32.mrf.mxu1 }
  0xae   : > { %798 = vrot.lane.b32.xlu1 %v797_v34, %s865_s28  ;;  %793 = vrot.lane.b32.xlu0 %v797_v34, %s866_s29 }
  0xaf   : > { %783 = vrot.lane.b32.xlu2 %v782_v35, %s866_s29  ;;  %472 = vmatpush.msra.mxu2 %v446_v33 }
  0xb0   : > { %689 = vmatmul.msk.f32.vlgmr.msra.gmra.mxu2 %vm353_vm4, %v687_v36 }
  0xb4   : > { %v409_v5 = vpop.f32.mrf.mxu1 }
  0xb6   : > { %541 = vperm.xlu0 %803, %v533_v41  }
  0xb7   : > { %788 = vrot.lane.b32.xlu2 %v782_v35, %s865_s28 }
  0xb8   : > { %690 = vmatmul.msk.f32.gmra.mxu2 %vm353_vm4, %v688_v38 }
  0xbf   : > { %536 = vperm.xlu2 %802, %v532_v42  }
 0x109   : > { %v784_v39 = vpop.permute.xlu2 %783 }
 0x10a   : > { %v786_v44 = vunpack.i.h.bf16 %v784_v39  ;;  %v785_v45 = vunpack.i.l.bf16 %v784_v39 }
 0x111   : > { %v789_v43 = vpop.permute.xlu2 %788 }
 0x112   : > { %v791_v46 = vunpack.i.h.bf16 %v789_v43  ;;  %v790_v47 = vunpack.i.l.bf16 %v789_v43 }
 0x114   : > { %v349_v48 = vsel %vm347_vm5, %v786_v44, %v791_v46  ;;  %v497_v49 = vsel %vm347_vm5, %v785_v45, %v790_v47 }
 0x115   : > { %374 = vmatpush.msra.mxu0 %v349_v48  ;;  %521 = vmatpush.msra.mxu3 %v497_v49 }
 0x119   : > { %v537_v3 = vpop.permute.xlu2 %536 }
 0x120   : > { %v799_v50 = vpop.permute.xlu1 %798  ;;  %v794_v51 = vpop.permute.xlu0 %793 }
 0x121   : > { %v801_v52 = vunpack.i.h.bf16 %v799_v50  ;;  %v800_v53 = vunpack.i.l.bf16 %v799_v50  ;;  %v796_v54 = vunpack.i.h.bf16 %v794_v51  ;;  %v795_v55 = vunpack.i.l.bf16 %v794_v51 }
 0x123   : > { %v348_v58 = vsel %vm347_vm5, %v796_v54, %v801_v52  ;;  %v496_v59 = vsel %vm347_vm5, %v795_v55, %v800_v53 }
 0x124   : > { %375 = vmatpush.msra.mxu0 %v348_v58  ;;  %522 = vmatpush.msra.mxu3 %v496_v59 }
 0x125   : > { %693 = vmatmul.msk.f32.vlgmr.msra.gmra.mxu3 %vm353_vm4, %v691_v56  ;;  %683 = vmatmul.msk.f32.vlgmr.msra.gmra.mxu0 %vm353_vm4, %v681_v57 }
 0x128   : > { %v542_v14 = vpop.permute.xlu0 %541 }
 0x12d   : > { %694 = vmatmul.msk.f32.gmra.mxu3 %vm353_vm4, %v692_v60  ;;  %684 = vmatmul.msk.f32.gmra.mxu0 %vm353_vm4, %v682_v61 }
 0x133   : > { %v474_v63 = vpop.f32.mrf.mxu2 }
 0x13b   : > { %v477_v8 = vpop.f32.mrf.mxu2 }
 0x1a2   : > { %v377_v0 = vpop.f32.mrf.mxu0 }
 0x1a3   : > { %v407_v1 = vadd.f32 %v406_v62, %v377_v0 }
 0x1a5   : > { %v480_v2 = vadd.f32 %v474_v63, %v407_v1 }
 0x1a8   : > { %v524_v4 = vpop.f32.mrf.mxu3 }
 0x1a9   : > { %v530_v6 = vadd.f32 %v524_v4, %v480_v2 }
 0x1aa   : > { %v380_v7 = vpop.f32.mrf.mxu0 }
 0x1ab   : > { %v544_v9 = vadd.f32 %v537_v3, %v530_v6  ;;  %v410_v10 = vadd.f32 %v409_v5, %v380_v7 }
 0x1ad   : > { %v546_v11 = vmax.f32 %v544_v9, 0.0  ;;  %v481_v12 = vadd.f32 %v477_v8, %v410_v10 }
 0x1af   : > { %549 = vst.msk [vmem:[%s326_s24] sm:$0xff] %vm548_vm6, %v546_v11 }
 0x1b0   : > { %v527_v13 = vpop.f32.mrf.mxu3 }
 0x1b1   : > { %v531_v15 = vadd.f32 %v527_v13, %v481_v12 }
 0x1b3   : > { %v545_v16 = vadd.f32 %v542_v14, %v531_v15 }
 0x1b5   : > { %v547_v17 = vmax.f32 %v545_v16, 0.0 }
 0x1b7   : > { %550 = vst.msk [vmem:[%s326_s24 + $0x8] sm:$0xff] %vm548_vm6, %v547_v17 }
 0x1b8 PF: > { %s14_s21 = sadd.s32 1, %s858_s21   ;;  %s1035_s15 = smov %s838_s16 }
 0x1b9   : > { %p11_p12 = scmp.ge.s32.totalorder %s14_s21, 6   ;;  %s1036_s16 = smov %s941_s26 }
 0x1ba   : > { %s1037_s17 = smov %s850_s19  ;;  %s1038_s18 = smov %s854_s20 }
 0x1bb   : > { %s1039_s19 = smov %s1042_s22  ;;  %s1040_s20 = smov %s1046_s23 }
 0x1bc   :  { %13 = sbr.rel (!%p11_p12) target bundleno = 4 (0x4), region = 118 }

</bundles_post_ra>
